<compile_context>
chip_gen: v7x
topology: tpu7x:2x2x1
jax: 0.10.0
libtpu: 0.0.40
codegen_flags: <defaults>
</compile_context>

<pallas_src>
import jax
import jax.numpy as jnp
from jax import lax
from jax.experimental import pallas as pl
from jax.experimental.pallas import tpu as pltpu


def _round_up(v, m):
    return ((v + m - 1) // m) * m


def _k_chunks(K, ST):
    """Yield (k0, k1) so each onehot/matmul chunk has output width ~256 lanes."""
    kg = max(1, 256 // ST)
    k0 = 0
    while k0 < K:
        yield k0, min(K, k0 + kg)
        k0 += kg


def _gather_max_chunked(x, idx_local, ST, bias=None, init=None):
    """One-hot-matmul gather of all K neighbors, max-reduced over K.

    x:         (C, NB) feature slab / tile
    idx_local: (K, ST) tile-local neighbor indices
    bias:      optional (K, ST) additive mask (0 / -inf) for out-of-tile indices
    init:      optional (C, ST) f32 running max to fold into
    returns:   (C, ST) f32
    """
    NB = x.shape[1]
    K = idx_local.shape[0]
    tile_max = init
    for k0, k1 in _k_chunks(K, ST):
        width = (k1 - k0) * ST
        idx_flat = idx_local[k0:k1].reshape(1, width)                 # (1, width)
        row_iota = lax.broadcasted_iota(jnp.int32, (NB, width), 0)    # (NB, width)
        onehot = (row_iota == idx_flat).astype(x.dtype)
        g = jnp.dot(x, onehot, preferred_element_type=jnp.float32)    # (C, width)
        for j in range(k1 - k0):
            gk = g[:, j * ST:(j + 1) * ST]                            # (C, ST) lane-aligned
            if bias is not None:
                gk = gk + bias[k0 + j][None, :]
            tile_max = gk if tile_max is None else jnp.maximum(tile_max, gk)
    return tile_max


def _maxpool_kernel_whole(x_ref, idx_ref, o_ref):
    # x_ref:   (1, C, N_pad) full feature slab (resident across S tiles)
    # idx_ref: (1, K, S_TILE) neighbor indices (S on the lane axis)
    # o_ref:   (1, C, S_TILE)
    x = x_ref[0]
    idx = idx_ref[0]
    ST = idx.shape[1]
    o_ref[0] = _gather_max_chunked(x, idx, ST).astype(o_ref.dtype)


def _maxpool_kernel_tiled(x_ref, idx_ref, o_ref, acc_ref):
    # x_ref:   (1, C, N_TILE)   feature tile for the current N block
    # idx_ref: (1, K, S_TILE)   neighbor indices (S on the lane axis)
    # o_ref:   (1, C, S_TILE)   output tile (written on the last N step)
    # acc_ref: (C, S_TILE) f32  running max across N tiles
    n = pl.program_id(2)

    @pl.when(n == 0)
    def _():
        acc_ref[...] = jnp.full(acc_ref.shape, -jnp.inf, dtype=acc_ref.dtype)

    x = x_ref[0]
    idx = idx_ref[0]
    NT = x.shape[1]
    ST = idx.shape[1]

    idx_local = idx - n * NT
    in_tile = (idx_local >= 0) & (idx_local < NT)
    # Additive mask hoisted out of the k loop: one add per k-slice instead of a
    # boolean broadcast + vselect (out-of-tile columns gather 0 and become -inf).
    bias = jnp.where(in_tile, jnp.float32(0.0), jnp.float32(-jnp.inf))

    acc_ref[...] = _gather_max_chunked(x, idx_local, ST, bias=bias, init=acc_ref[...])

    @pl.when(n == pl.num_programs(2) - 1)
    def _():
        o_ref[0] = acc_ref[...].astype(o_ref.dtype)


def _vmem_budget_bytes():
    """Per-core VMEM budget: ~75% of physical capacity (48 MiB fallback)."""
    try:
        cap = int(pltpu.get_tpu_info().vmem_capacity_bytes)
        if cap > 0:
            return min(cap - 16 * 1024 * 1024, (cap * 3) // 4)
    except Exception:
        pass
    return 48 * 1024 * 1024  # safe even on v7x (64 MiB physical per TensorCore)


def _estimate_vmem_bytes(C, nt, st, K, dtype_bytes, tiled):
    kg = max(1, 256 // st)
    chunk_w = min(K, kg) * st
    x_buf = 2 * C * nt * dtype_bytes                 # double-buffered feature block
    idx_buf = 2 * K * st * 4
    out_buf = 2 * C * st * dtype_bytes
    onehot_tmp = nt * chunk_w * (4 + dtype_bytes)    # iota (i32) + onehot chunk
    g_tmp = C * chunk_w * 4
    acc = C * st * 4 * (2 if tiled else 1)
    slack = 2 * 1024 * 1024
    return x_buf + idx_buf + out_buf + onehot_tmp + g_tmp + acc + slack


def max_pool(features, points, support_points, indices, *,
             s_tile=None, n_tile=None, compute_dtype=None,
             vmem_budget_bytes=None):
    """Pallas equivalent of MaxPool.forward(input, points, support_points, indices).

    features: (B, C, N) float features
    points, support_points: unused by the op (kept for API parity with the module)
    indices: (B, S, K) integer neighbor indices, each assumed in [0, N)
    returns: (B, C, S) max over the K gathered neighbors, in features.dtype
    """
    del points, support_points  # not used by the PyTorch forward either
    B, C, N = features.shape
    _, S, K = indices.shape
    out_dtype = features.dtype
    if compute_dtype is not None:
        features = features.astype(compute_dtype)
    dtype_bytes = jnp.dtype(features.dtype).itemsize
    indices = indices.astype(jnp.int32)

    budget = int(vmem_budget_bytes) if vmem_budget_bytes else _vmem_budget_bytes()

    # ---- S tiling: lane-aligned, default 256 wide, keep >= 2 tiles when B == 1.
    s_pad = _round_up(S, 128)
    if s_tile is None:
        st = 256 if (s_pad >= 256 and s_pad % 256 == 0) else 128
        if B == 1 and s_pad // st < 2 and s_pad >= 256:
            st = 128  # give the second v7x TensorCore some S tiles
    else:
        st = _round_up(max(min(s_tile, s_pad), 128), 128)
    s_pad = _round_up(s_pad, st)

    # ---- N tiling: whole-N fast path when the slab fits the VMEM budget.
    n_pad = _round_up(N, 128)
    if n_tile is None:
        if _estimate_vmem_bytes(C, n_pad, st, K, dtype_bytes, tiled=False) <= budget:
            nt = n_pad
        else:
            nt = 128
            for cand in (4096, 2048, 1024, 512, 256, 128):
                if cand <= n_pad and _estimate_vmem_bytes(
                        C, cand, st, K, dtype_bytes, tiled=True) <= budget:
                    nt = cand
                    break
    else:
        nt = _round_up(max(min(n_tile, n_pad), 128), 128)
    n_pad = _round_up(n_pad, nt)
    whole_n = nt >= n_pad

    # ---- Pad inputs.  Padded feature columns are never selected (indices < N);
    # padded support slots gather index 0 (valid) and are sliced off below.
    if n_pad != N:
        features = jnp.pad(features, ((0, 0), (0, 0), (0, n_pad - N)))
    # Indices transposed to (B, K, S): S sits on the lane axis of the block.
    idx_t = jnp.transpose(indices, (0, 2, 1))
    if s_pad != S:
        idx_t = jnp.pad(idx_t, ((0, 0), (0, 0), (0, s_pad - S)))

    if whole_n:
        grid = (B, s_pad // st)
        grid_spec = pltpu.PrefetchScalarGridSpec(
            num_scalar_prefetch=0,
            grid=grid,
            in_specs=[
                # Block index is constant across the S axis -> the feature slab
                # is DMA'd once per batch and stays resident in VMEM.
                pl.BlockSpec((1, C, n_pad), lambda b, s: (b, 0, 0)),
                pl.BlockSpec((1, K, st), lambda b, s: (b, 0, s)),
            ],
            out_specs=pl.BlockSpec((1, C, st), lambda b, s: (b, 0, s)),
        )
        kernel = _maxpool_kernel_whole
        dim_sem = ("parallel", "parallel")
    else:
        grid = (B, s_pad // st, n_pad // nt)
        grid_spec = pltpu.PrefetchScalarGridSpec(
            num_scalar_prefetch=0,
            grid=grid,
            in_specs=[
                pl.BlockSpec((1, C, nt), lambda b, s, n: (b, 0, n)),
                pl.BlockSpec((1, K, st), lambda b, s, n: (b, 0, s)),
            ],
            out_specs=pl.BlockSpec((1, C, st), lambda b, s, n: (b, 0, s)),
            scratch_shapes=[pltpu.VMEM((C, st), jnp.float32)],
        )
        kernel = _maxpool_kernel_tiled
        dim_sem = ("parallel", "parallel", "arbitrary")

    out = pl.pallas_call(
        kernel,
        out_shape=jax.ShapeDtypeStruct((B, C, s_pad), out_dtype),
        grid_spec=grid_spec,
        compiler_params=pltpu.CompilerParams(
            dimension_semantics=dim_sem,
            vmem_limit_bytes=int(budget),
        ),
    )(features, idx_t)

    return out[:, :, :S]


if __name__ == "__main__":
    key = jax.random.PRNGKey(0)
    k_x, k_pts, k_idx = jax.random.split(key, 3)

    # Case 1: tiny shapes matching the module's typical use; hits the whole-N path.
    B, C, N, S, K = 2, 4, 16, 8, 4
    x = jax.random.normal(k_x, (B, C, N), dtype=jnp.float32)
    points = jax.random.normal(k_pts, (B, 3, N), dtype=jnp.float32)       # unused by op
    support_points = points[:, :, :S]                                     # unused by op
    indices = jax.random.randint(k_idx, (B, S, K), 0, N, dtype=jnp.int32)

    out = jax.block_until_ready(max_pool(x, points, support_points, indices))

    ref = jax.vmap(lambda xb, ib: jnp.max(xb[:, ib], axis=-1))(x, indices)   # (B, C, S)
    assert out.shape == (B, C, S), out.shape
    assert out.dtype == x.dtype, out.dtype
    assert jnp.allclose(out, ref, atol=1e-5), "Pallas MaxPool mismatch (whole-N path)"

    # Case 2: force the tiled-N reduction path (multiple N tiles) and check it too.
    B2, C2, N2, S2, K2 = 2, 8, 300, 160, 3
    k_x2, k_idx2 = jax.random.split(k_idx)
    x2 = jax.random.normal(k_x2, (B2, C2, N2), dtype=jnp.float32)
    idx2 = jax.random.randint(k_idx2, (B2, S2, K2), 0, N2, dtype=jnp.int32)

    out2 = jax.block_until_ready(max_pool(x2, None, None, idx2, n_tile=128))
    ref2 = jax.vmap(lambda xb, ib: jnp.max(xb[:, ib], axis=-1))(x2, idx2)
    assert out2.shape == (B2, C2, S2), out2.shape
    assert jnp.allclose(out2, ref2, atol=1e-5), "Pallas MaxPool mismatch (tiled-N path)"

    print("KERNEL_OK")
</pallas_src>

<mosaic_0001>
module attributes {stable_mosaic.version = 11 : i64} {
  func.func @_maxpool_kernel_whole(%arg0: i32, %arg1: i32, %arg2: memref<1x4x128xf32, #tpu.memory_space<vmem>>, %arg3: memref<1x4x128xi32, #tpu.memory_space<vmem>>, %arg4: memref<1x4x128xf32, #tpu.memory_space<vmem>>) attributes {dimension_semantics = [#tpu.dimension_semantics<parallel>, #tpu.dimension_semantics<parallel>], iteration_bounds = array<i64: 2, 1>, scalar_prefetch = 0 : i64, scratch_operands = 0 : i64, tpu.core_type = #tpu.core_type<tc>, window_params = [{transform_indices = @transform_0, window_bounds = array<i64: 1, 4, 128>}, {transform_indices = @transform_1, window_bounds = array<i64: 1, 4, 128>}, {transform_indices = @transform_2, window_bounds = array<i64: 1, 4, 128>}]} {
    %c0 = arith.constant 0 : index
    %c0_0 = arith.constant 0 : index
    %c0_1 = arith.constant 0 : index
    %0 = vector.load %arg2[%c0, %c0_0, %c0_1] : memref<1x4x128xf32, #tpu.memory_space<vmem>>, vector<1x4x128xf32>
    %1 = vector.shape_cast %0 : vector<1x4x128xf32> to vector<4x128xf32>
    %c0_2 = arith.constant 0 : index
    %c0_3 = arith.constant 0 : index
    %c0_4 = arith.constant 0 : index
    %2 = vector.load %arg3[%c0_2, %c0_3, %c0_4] : memref<1x4x128xi32, #tpu.memory_space<vmem>>, vector<1x4x128xi32>
    %3 = vector.shape_cast %2 : vector<1x4x128xi32> to vector<4x128xi32>
    %4 = vector.extract_strided_slice %3 {offsets = [0, 0], sizes = [2, 128], strides = [1, 1]} : vector<4x128xi32> to vector<2x128xi32>
    %5 = vector.shape_cast %4 : vector<2x128xi32> to vector<1x256xi32>
    %6 = tpu.iota {dimensions = array<i32: 0>} : vector<128x256xi32>
    %7 = vector.broadcast %5 : vector<1x256xi32> to vector<128x256xi32>
    %8 = arith.cmpi eq, %6, %7 : vector<128x256xi32>
    %9 = arith.extui %8 : vector<128x256xi1> to vector<128x256xi32>
    %10 = arith.sitofp %9 : vector<128x256xi32> to vector<128x256xf32>
    %cst = arith.constant dense<0.000000e+00> : vector<4x256xf32>
    %11 = tpu.matmul %1, %10, %cst {dimension_numbers = #tpu.dot_dimension_numbers<[1], [0], [0], [1], [0, 0, 1, 1], [], []>} : vector<4x128xf32>, vector<128x256xf32>, vector<4x256xf32> -> vector<4x256xf32>
    %12 = vector.extract_strided_slice %11 {offsets = [0, 0], sizes = [4, 128], strides = [1, 1]} : vector<4x256xf32> to vector<4x128xf32>
    %13 = vector.extract_strided_slice %11 {offsets = [0, 128], sizes = [4, 128], strides = [1, 1]} : vector<4x256xf32> to vector<4x128xf32>
    %14 = arith.maximumf %12, %13 : vector<4x128xf32>
    %15 = vector.extract_strided_slice %3 {offsets = [2, 0], sizes = [2, 128], strides = [1, 1]} : vector<4x128xi32> to vector<2x128xi32>
    %16 = vector.shape_cast %15 : vector<2x128xi32> to vector<1x256xi32>
    %17 = tpu.iota {dimensions = array<i32: 0>} : vector<128x256xi32>
    %18 = vector.broadcast %16 : vector<1x256xi32> to vector<128x256xi32>
    %19 = arith.cmpi eq, %17, %18 : vector<128x256xi32>
    %20 = arith.extui %19 : vector<128x256xi1> to vector<128x256xi32>
    %21 = arith.sitofp %20 : vector<128x256xi32> to vector<128x256xf32>
    %cst_5 = arith.constant dense<0.000000e+00> : vector<4x256xf32>
    %22 = tpu.matmul %1, %21, %cst_5 {dimension_numbers = #tpu.dot_dimension_numbers<[1], [0], [0], [1], [0, 0, 1, 1], [], []>} : vector<4x128xf32>, vector<128x256xf32>, vector<4x256xf32> -> vector<4x256xf32>
    %23 = vector.extract_strided_slice %22 {offsets = [0, 0], sizes = [4, 128], strides = [1, 1]} : vector<4x256xf32> to vector<4x128xf32>
    %24 = arith.maximumf %14, %23 : vector<4x128xf32>
    %25 = vector.extract_strided_slice %22 {offsets = [0, 128], sizes = [4, 128], strides = [1, 1]} : vector<4x256xf32> to vector<4x128xf32>
    %26 = arith.maximumf %24, %25 : vector<4x128xf32>
    %c0_6 = arith.constant 0 : index
    %c0_7 = arith.constant 0 : index
    %c0_8 = arith.constant 0 : index
    %27 = vector.load %arg4[%c0_6, %c0_7, %c0_8] : memref<1x4x128xf32, #tpu.memory_space<vmem>>, vector<1x4x128xf32>
    %28 = vector.shape_cast %27 : vector<1x4x128xf32> to vector<4x128xf32>
    %29 = vector.shape_cast %26 : vector<4x128xf32> to vector<1x4x128xf32>
    tpu.vector_store %arg4[%c0_6, %c0_7, %c0_8], %29 {strides = array<i32>} : memref<1x4x128xf32, #tpu.memory_space<vmem>>, vector<1x4x128xf32>,
    return
  }
  func.func @transform_0(%arg0: i32, %arg1: i32) -> (i32, i32, i32) {
    %c0_i32 = arith.constant 0 : i32
    %c0_i32_0 = arith.constant 0 : i32
    %c0_i32_1 = arith.constant 0 : i32
    return %arg0, %c0_i32, %c0_i32_0 : i32, i32, i32
  }
  func.func @transform_1(%arg0: i32, %arg1: i32) -> (i32, i32, i32) {
    %c0_i32 = arith.constant 0 : i32
    %c0_i32_0 = arith.constant 0 : i32
    return %arg0, %c0_i32, %arg1 : i32, i32, i32
  }
  func.func @transform_2(%arg0: i32, %arg1: i32) -> (i32, i32, i32) {
    %c0_i32 = arith.constant 0 : i32
    %c0_i32_0 = arith.constant 0 : i32
    return %arg0, %c0_i32, %arg1 : i32, i32, i32
  }
}

</mosaic_0001>

<bundles_post_ra>
// kernel: tpu_custom_call.1
= control target key start
LH: loop header
LB: loop body
LE: loop exit
PB: predicated region body
PF: predicated region fallthrough
CT: control target
= control target key end

     0   :  { %7 = vsyncpa [#allocation3], 0  ;;  %s1541_s0 = inlined_call_operand.hbm [shape: f32[2,4,128], index: 0, kind: input, shape index: {}]   ;;  %s1542_s1 = inlined_call_operand.hbm [shape: s32[2,4,128], index: 1, kind: input, shape index: {}]   ;;  %s1543_s2 = inlined_call_operand.hbm [shape: f32[2,4,128], index: 2, kind: output, shape index: {}]  }
   0x1   :  { %9 = vsyncpa [#allocation3 + $0x1], 0 }
   0x2   :  { %10 = vsyncpa [#allocation6], 0 }
   0x3   :  { %12 = vsyncpa [#allocation6 + $0x1], 0 }
   0x4   :  { %13 = vsyncpa [#allocation4], 0 }
   0x5   :  { %15 = vsyncpa [#allocation4 + $0x1], 0  ;;  %s1182_s9 = smov 0   ;;  %s1184_s10 = smov 0  }
   0x6   :  { %s1186_s11 = smov 0   ;;  %s1188_s12 = smov 0  }
   0x7   :  { %s1190_s13 = smov 0   ;;  %s1192_s14 = smov 0  }
   0x8 LB: > { %s735_s15 = sadd.s32 4294967295, %s1159_s14   ;;  %s736_s16 = sadd.s32 4294967294, %s1159_s14   ;;  %s1159_s14 = sphi %s1192_s14, %s21_s14   ;;  %s1155_s13 = sphi %s1190_s13, %s1563_s13   ;;  %s1151_s12 = sphi %s1188_s12, %s1562_s12   ;;  %s1147_s11 = sphi %s1186_s11, %s1561_s11   ;;  %s1143_s10 = sphi %s1184_s10, %s1560_s10   ;;  %s1139_s9 = sphi %s1182_s9, %s1559_s9  }
   0x9   : > { %s33_s17 = sadd.s32 1, %s1155_s13  ;;  %s40_s18 = sadd.s32 1, %s1147_s11 }
   0xa   : > { %p35_p0 = scmp.ge.s32.totalorder %s33_s17, 2  ;;  %p47_p1 = scmp.ne.s32.totalorder %s1147_s11, %s1143_s10 }
   0xb   : > { %p48_p2 = scmp.eq.s32.totalorder %s1159_s14, 0  ;;  %p53_p3 = scmp.ne.s32.totalorder %s1143_s10, %s1139_s9 }
   0xc   : > { %s1565_s17 = smov (%p35_p0, %s33_s17), 0  ;;  %p54_p5 = scmp.eq.s32.totalorder %s735_s15, 0 }
   0xd   : > { %p1223_p4 = por %p48_p2, %p47_p1  ;;  %s37_s20 = ssub.s32 %s1155_s13, %s1565_s17 }
   0xe   : > { %p107_p6 = scmp.eq.s32.totalorder %s735_s15, 1  ;;  %p38_p7 = scmp.eq.s32.totalorder %s37_s20, 0 }
   0xf   : > { %p1229_p8 = por %p54_p5, %p53_p3  ;;  %p113_p10 = scmp.eq.s32.totalorder %s736_s16, 1 }
  0x10   : > { %p1233_p9 = por %p107_p6, %p47_p1  ;;  %p960_p13 = scmp.lt.s32.totalorder %s1159_s14, 2 }
  0x11   : > { %s1547_s21 = scalar_select %p1229_p8, 1, 0 }
  0x12   : > { %s1548_s22 = scalar_select %p1233_p9, 1, 0 }
  0x13   : > { %s1238_s23 = scalar_select %p38_p7, %s1147_s11, %s40_s18  }
  0x14   : > { %p1240_p11 = por %p113_p10, %p53_p3  ;;  %s1247_s25 = sand.u32 1, %s1147_s11  }
  0x15   : > { %s739_s26 = sshll.u32 %s1247_s25, 2  ;;  %s740_s27 = sshll.u32 %s1155_s13, 6 }
  0x16   : > { %s1549_s24 = scalar_select %p1240_p11, 1, 0 }
  0x17   : > { %s1256_s30 = scalar_lea.hbm %s1541_s0, %s740_s27  ;;  %s137_s3 = scalar_lea.vmem [#allocation2], %s739_s26 }
  0x18   : > { %s144_s4 = sshll.u32 %s137_s3, 4  ;;  %p1264_p0 = pnand %p960_p13, %p1223_p4  ;;  %s1260_s4 = int_to_ptr.vmem [resolvable:$true] %s144_s4 }
  0x19   : > { %s134_s6 = scalar_lea.sflag [#allocation3], %s1247_s25  ;;  %s1013_s7 = scalar_lea.hbm %s1256_s30, 64 }
  0x1a   : > { %p1014_p3 = scmp.ne.s32.totalorder %s1256_s30, %s1013_s7  ;;  %p1015_p5 = pneg %p1264_p0 }
  0x1b   : > { %s1018_s16 = scalar_lea.hbm %s1541_s0, 128  ;;  %p1019_p4 = scmp.lt.u32.totalorder %s1256_s30, %s1541_s0 }
  0x1c   : > { %p1016_p6 = pnand %p1015_p5, %p1014_p3  ;;  %p1020_p10 = scmp.lt.u32.totalorder %s1018_s16, %s1013_s7 }
  0x1d   : > { %p1022_p12 = scmp.lt.u32.totalorder %s1013_s7, %s1256_s30 }
  0x1e   : > { %p1017_p7 = pneg %p1016_p6  ;;  %p1021_p13 = por %p1020_p10, %p1019_p4 }
  0x20   : > { %p1023_p1 = por %p1022_p12, %p1021_p13 }
  0x22   : > { %p1024_p2 = pnand %p1023_p1, %p1017_p7 }
  0x24   : > { %1027 = shalt.err (!%p1024_p2)
}
  0x25   : > { %s1028_s20 = scalar_lea.vmem %s1260_s4, 64  ;;  %s1161_s28 = smov [#allocation2]  }
  0x26   : > { %p1029_p3 = scmp.ne.s32.totalorder %s1260_s4, %s1028_s20  ;;  %s1033_s29 = sshll.u32 %s1161_s28, 4  ;;  %s1034_s29 = int_to_ptr.vmem [resolvable:$false] %s1033_s29 }
  0x27   : > { %s1035_s3 = scalar_lea.vmem %s1034_s29, 128  ;;  %p1036_p9 = scmp.lt.s32.totalorder %s1260_s4, %s1034_s29 }
  0x28   : > { %p1031_p6 = pnand %p1029_p3, %p1015_p5  ;;  %p1037_p4 = scmp.lt.s32.totalorder %s1035_s3, %s1028_s20 }
  0x2a   : > { %p1032_p11 = pneg %p1031_p6  ;;  %p1038_p10 = por %p1037_p4, %p1036_p9 }
  0x2c   : > { %p1039_p12 = pnand %p1038_p10, %p1032_p11 }
  0x2e   : > { %1042 = shalt.err (!%p1039_p12)
}
  0x2f   : > { %952 = dma.hbm_to_vmem [thread:$0]  (!%p1264_p0), %s1256_s30, 64, %s1260_s4, %s134_s6  }
  0x30   : > { %p1551_p1 = scmp.lt.s32.totalorder %s1159_s14, 3  ;;  %p1552_p2 = scmp.ge.s32.totalorder %s1159_s14, 1 }
  0x31   : > { %s1309_s16 = scalar_lea.hbm %s1542_s1, %s740_s27  ;;  %s155_s18 = scalar_lea.vmem [#allocation5], %s739_s26 }
  0x32   : > { %p1300_p7 = pnand %p1552_p2, %p1551_p1  ;;  %s163_s19 = sshll.u32 %s155_s18, 4  ;;  %s164_s19 = int_to_ptr.vmem [resolvable:$true] %s163_s19 }
  0x33   : > { %s152_s30 = scalar_lea.sflag [#allocation6], %s1247_s25  ;;  %s1043_s4 = scalar_lea.hbm %s1309_s16, 64 }
  0x34   : > { %s1553_s7 = scalar_select %p1300_p7, 1, 0 }
  0x35   : > { %p1044_p9 = scmp.ne.s32.totalorder %s1309_s16, %s1043_s4  ;;  %s1048_s27 = scalar_lea.hbm %s1542_s1, 128 }
  0x36   : > { %p1049_p3 = scmp.lt.u32.totalorder %s1309_s16, %s1542_s1  ;;  %p1050_p6 = scmp.lt.u32.totalorder %s1048_s27, %s1043_s4 }
  0x37   : > { %p1046_p11 = pnand %p1044_p9, %p1015_p5  ;;  %p1052_p10 = scmp.lt.u32.totalorder %s1043_s4, %s1309_s16 }
  0x38   : > { %p1051_p4 = por %p1050_p6, %p1049_p3 }
  0x39   : > { %p1047_p13 = pneg %p1046_p11 }
  0x3a   : > { %p1053_p12 = por %p1052_p10, %p1051_p4 }
  0x3c   : > { %p1054_p1 = pnand %p1053_p12, %p1047_p13 }
  0x3e   : > { %1057 = shalt.err (!%p1054_p1)
}
  0x3f   : > { %s1058_s25 = scalar_lea.vmem %s164_s19, 64  ;;  %s1162_s26 = smov [#allocation5]  }
  0x40   : > { %p1059_p2 = scmp.ne.s32.totalorder %s164_s19, %s1058_s25  ;;  %s1063_s3 = sshll.u32 %s1162_s26, 4  ;;  %s1064_s3 = int_to_ptr.vmem [resolvable:$false] %s1063_s3 }
  0x41   : > { %s1065_s8 = scalar_lea.vmem %s1064_s3, 128  ;;  %p1066_p8 = scmp.lt.s32.totalorder %s164_s19, %s1064_s3 }
  0x42   : > { %p1061_p9 = pnand %p1059_p2, %p1015_p5  ;;  %p1067_p7 = scmp.lt.s32.totalorder %s1065_s8, %s1058_s25 }
  0x44   : > { %p1062_p11 = pneg %p1061_p9  ;;  %p1068_p3 = por %p1067_p7, %p1066_p8 }
  0x46   : > { %p1069_p6 = pnand %p1068_p3, %p1062_p11 }
  0x48   : > { %1072 = shalt.err (!%p1069_p6)
}
  0x49   : > { %955 = dma.hbm_to_vmem [thread:$0]  (!%p1264_p0), %s1309_s16, 64, %s164_s19, %s152_s30  }
  0x4a   : > { %p1554_p13 = scmp.ne.s32.totalorder %s1553_s7, 0 }
  0x4b   : > { %s1336_s15 = sand.u32 (!%p1554_p13), 1, %s1143_s10   ;;  %p1555_p8 = scmp.ne.s32.totalorder (!%p1554_p13), %s1547_s21, 0 }
  0x4c   : > { %172 = sbr.rel (%p1554_p13) target bundleno = 366 (0x16e), region = 28  ;;  %s1339_s18 = sshll.u32 (!%p1554_p13), %s1336_s15, 2 }
  0x4d   : > { %s175_s4 = scalar_lea.sflag (!%p1554_p13), [#allocation3], %s1336_s15  ;;  %s178_s6 = scalar_lea.vmem (!%p1554_p13), [#allocation2], %s1339_s18 }
  0x53   : > { %1126 = dma.done.wait (%p1555_p8), %s175_s4, 64  }
  0x54   : > { %1128 = vsyncadd (%p1555_p8), %s175_s4, 4294967232  ;;  %s184_s5 = scalar_lea.sflag [#allocation6], %s1336_s15  ;;  %s187_s7 = scalar_lea.vmem [#allocation5], %s1339_s18 }
  0x55   : > { %1130 = dma.done.wait (%p1555_p8), %s184_s5, 64  }
  0x56   : > { %1132 = vsyncadd (%p1555_p8), %s184_s5, 4294967232  ;;  %v218_v0 = vlaneseq  ;;  %v1163_v1 = vmov 1966171168   ;;  %v1164_v3 = vmov 0.0   ;;  %v214_v9 = vld [vmem:[%s187_s7] sm:$0xf] }
  0x57   : > { %v216_v2 = vunpack.c.l.s4 %v1163_v1  ;;  %415 = vmatprep.mubr.f32.mxu0 %v1164_v3  ;;  %607 = vmatprep.mubr.f32.mxu1 %v1164_v3  ;;  %v423_v11 = vrot.slane %v214_v9, 2  ;;  %v1165_v26 = vmov 1.0|1.0   ;;  %v213_v37 = vld [vmem:[%s178_s6] sm:$0xf]  ;;  %s876_s21 = sshll.u32 %s1151_s12, 6 }
  0x58   : > { %v1353_v4 = vshrl.u32 %v218_v0, 7  ;;  %s212_s16 = scalar_lea.vmem [#allocation7], %s1339_s18  ;;  %s1492_s27 = scalar_lea.hbm %s1543_s2, %s876_s21 }
  0x59   : > { %v217_v5 = vunpack.c.0.s8 %v216_v2  ;;  %s632_s19 = sshll.u32 %s212_s16, 4  ;;  %s618_s28 = scalar_lea.sflag [#allocation4], %s1336_s15  ;;  %s1494_s19 = int_to_ptr.vmem [resolvable:$true] %s632_s19 }
  0x5a   : > { %v241_v7 = vsub.s32 0, %v1353_v4  ;;  %v245_v8 = vsub.s32 4, %v1353_v4  ;;  %v224_v15 = vadd.s32 8, %v1353_v4  ;;  %v225_v16 = vadd.s32 16, %v1353_v4  ;;  %s1073_s29 = scalar_lea.vmem %s1494_s19, 64  ;;  %p1556_p5 = scmp.ne.s32.totalorder %s1548_s22, 0 }
  0x5b   : > { %v220_v6 = vsub.s32 %v217_v5, %v1353_v4  ;;  %v226_v17 = vadd.s32 24, %v1353_v4  ;;  %v227_v22 = vadd.s32 32, %v1353_v4  ;;  %v228_v23 = vadd.s32 40, %v1353_v4  ;;  %p1074_p0 = scmp.ne.s32.totalorder %s1494_s19, %s1073_s29  ;;  %s1166_s12 = smov [#allocation7]  }
  0x5c   : > { %v229_v27 = vadd.s32 48, %v1353_v4  ;;  %v230_v28 = vadd.s32 56, %v1353_v4  ;;  %v231_v29 = vadd.s32 64, %v1353_v4  ;;  %v232_v30 = vadd.s32 72, %v1353_v4  ;;  %s1077_s25 = sshll.u32 %s1166_s12, 4  ;;  %s1078_s25 = int_to_ptr.vmem [resolvable:$false] %s1077_s25 }
  0x5d   : > { %v221_v10 = vrot.slane %v214_v9, %v220_v6  ;;  %v430_v14 = vrot.slane %v423_v11, %v220_v6  ;;  %v233_v31 = vadd.s32 80, %v1353_v4  ;;  %v234_v32 = vadd.s32 88, %v1353_v4  ;;  %p1075_p7 = pnand %p1074_p0, %p1556_p5  ;;  %s1079_s26 = scalar_lea.vmem %s1078_s25, 128 }
  0x5e   : > { %v235_v33 = vadd.s32 96, %v1353_v4  ;;  %v236_v34 = vadd.s32 104, %v1353_v4  ;;  %v237_v35 = vadd.s32 112, %v1353_v4  ;;  %v238_v36 = vadd.s32 120, %v1353_v4  ;;  %p1080_p10 = scmp.lt.s32.totalorder %s1494_s19, %s1078_s25  ;;  %p1081_p12 = scmp.lt.s32.totalorder %s1079_s26, %s1073_s29 }
  0x5f   : > { %v242_v12 = vrot.slane %v221_v10, %v241_v7  ;;  %v246_v13 = vrot.slane %v221_v10, %v245_v8  ;;  %v434_v20 = vrot.slane %v430_v14, %v241_v7  ;;  %v438_v21 = vrot.slane %v430_v14, %v245_v8  ;;  %p1076_p4 = pneg %p1075_p7 }
  0x60   : > { %p1082_p1 = por %p1081_p12, %p1080_p10 }
  0x61   : > { %v1361_v18 = vrot.slane %v242_v12, %v241_v7  ;;  %v1363_v19 = vrot.slane %v246_v13, %v241_v7  ;;  %v1367_v24 = vrot.slane %v434_v20, %v241_v7  ;;  %v1369_v25 = vrot.slane %v438_v21, %v241_v7 }
  0x62   : > { %p1083_p2 = pnand %p1082_p1, %p1076_p4 }
  0x63   : > { %vm256_vm0 = vcmp.eq.s32.totalorder %v1353_v4, %v1363_v19  ;;  %vm258_vm1 = vcmp.eq.s32.totalorder %v224_v15, %v1363_v19  ;;  %vm255_vm3 = vcmp.eq.s32.totalorder %v1353_v4, %v1361_v18  ;;  %vm257_vm4 = vcmp.eq.s32.totalorder %v224_v15, %v1361_v18 }
  0x64   : > { %vm879_vm2 = vmpackc.low %vm258_vm1, %vm256_vm0  ;;  %vm260_vm5 = vcmp.eq.s32.totalorder %v225_v16, %v1363_v19  ;;  %vm262_vm6 = vcmp.eq.s32.totalorder %v226_v17, %v1363_v19  ;;  %vm448_vm8 = vcmp.eq.s32.totalorder %v1353_v4, %v1369_v25  ;;  %vm450_vm9 = vcmp.eq.s32.totalorder %v224_v15, %v1369_v25 }
  0x65   : > { %880 = vmatprep.subr.msk.bf16.mxu0 %vm879_vm2, %v1165_v26  ;;  %vm881_vm7 = vmpackc.low %vm257_vm4, %vm255_vm3  ;;  %vm447_vm10 = vcmp.eq.s32.totalorder %v1353_v4, %v1367_v24  ;;  %vm449_vm11 = vcmp.eq.s32.totalorder %v224_v15, %v1367_v24  ;;  %vm259_vm13 = vcmp.eq.s32.totalorder %v225_v16, %v1361_v18  ;;  %vm261_vm14 = vcmp.eq.s32.totalorder %v226_v17, %v1361_v18 }
  0x66   : > { %882 = vmatpush1.bf16.msk.msra.mxu0 %vm881_vm7, %v1165_v26  ;;  %vm911_vm12 = vmpackc.low %vm450_vm9, %vm448_vm8  ;;  %vm452_vm0 = vcmp.eq.s32.totalorder %v225_v16, %v1369_v25  ;;  %vm454_vm1 = vcmp.eq.s32.totalorder %v226_v17, %v1369_v25  ;;  %vm451_vm3 = vcmp.eq.s32.totalorder %v225_v16, %v1367_v24  ;;  %vm453_vm4 = vcmp.eq.s32.totalorder %v226_v17, %v1367_v24 }
  0x67   : > { %912 = vmatprep.subr.msk.bf16.mxu1 %vm911_vm12, %v1165_v26  ;;  %vm913_vm15 = vmpackc.low %vm449_vm11, %vm447_vm10  ;;  %vm264_vm8 = vcmp.eq.s32.totalorder %v227_v22, %v1363_v19  ;;  %vm266_vm9 = vcmp.eq.s32.totalorder %v228_v23, %v1363_v19  ;;  %vm456_vm12 = vcmp.eq.s32.totalorder %v227_v22, %v1369_v25 }
  0x68   : > { %914 = vmatpush1.bf16.msk.msra.mxu1 %vm913_vm15, %v1165_v26  ;;  %vm883_vm2 = vmpackc.low %vm262_vm6, %vm260_vm5  ;;  %vm263_vm5 = vcmp.eq.s32.totalorder %v227_v22, %v1361_v18  ;;  %vm265_vm6 = vcmp.eq.s32.totalorder %v228_v23, %v1361_v18  ;;  %vm455_vm15 = vcmp.eq.s32.totalorder %v227_v22, %v1367_v24 }
  0x69   : > { %884 = vmatprep.subr.msk.bf16.mxu0 %vm883_vm2, %v1165_v26  ;;  %vm885_vm7 = vmpackc.low %vm261_vm14, %vm259_vm13  ;;  %vm458_vm13 = vcmp.eq.s32.totalorder %v228_v23, %v1369_v25  ;;  %vm457_vm2 = vcmp.eq.s32.totalorder %v228_v23, %v1367_v24 }
  0x6a   : > { %886 = vmatpush1.bf16.msk.msra.mxu0 %vm885_vm7, %v1165_v26  ;;  %vm915_vm10 = vmpackc.low %vm454_vm1, %vm452_vm0  ;;  %vm268_vm1 = vcmp.eq.s32.totalorder %v229_v27, %v1363_v19  ;;  %vm270_vm7 = vcmp.eq.s32.totalorder %v230_v28, %v1363_v19 }
  0x6b   : > { %916 = vmatprep.subr.msk.bf16.mxu1 %vm915_vm10, %v1165_v26  ;;  %vm917_vm11 = vmpackc.low %vm453_vm4, %vm451_vm3  ;;  %vm267_vm4 = vcmp.eq.s32.totalorder %v229_v27, %v1361_v18  ;;  %vm460_vm10 = vcmp.eq.s32.totalorder %v229_v27, %v1369_v25 }
  0x6c   : > { %918 = vmatpush1.bf16.msk.msra.mxu1 %vm917_vm11, %v1165_v26  ;;  %vm887_vm14 = vmpackc.low %vm266_vm9, %vm264_vm8  ;;  %vm269_vm8 = vcmp.eq.s32.totalorder %v230_v28, %v1361_v18  ;;  %vm459_vm11 = vcmp.eq.s32.totalorder %v229_v27, %v1367_v24 }
  0x6d   : > { %888 = vmatprep.subr.msk.bf16.mxu0 %vm887_vm14, %v1165_v26  ;;  %vm889_vm0 = vmpackc.low %vm265_vm6, %vm263_vm5  ;;  %vm462_vm5 = vcmp.eq.s32.totalorder %v230_v28, %v1369_v25  ;;  %vm461_vm14 = vcmp.eq.s32.totalorder %v230_v28, %v1367_v24 }
  0x6e   : > { %890 = vmatpush1.bf16.msk.msra.mxu0 %vm889_vm0, %v1165_v26  ;;  %vm919_vm3 = vmpackc.low %vm458_vm13, %vm456_vm12  ;;  %vm272_vm13 = vcmp.eq.s32.totalorder %v231_v29, %v1363_v19  ;;  %vm274_vm0 = vcmp.eq.s32.totalorder %v232_v30, %v1363_v19 }
  0x6f   : > { %920 = vmatprep.subr.msk.bf16.mxu1 %vm919_vm3, %v1165_v26  ;;  %vm921_vm9 = vmpackc.low %vm457_vm2, %vm455_vm15  ;;  %vm271_vm2 = vcmp.eq.s32.totalorder %v231_v29, %v1361_v18  ;;  %vm464_vm3 = vcmp.eq.s32.totalorder %v231_v29, %v1369_v25 }
  0x70   : > { %922 = vmatpush1.bf16.msk.msra.mxu1 %vm921_vm9, %v1165_v26  ;;  %vm891_vm6 = vmpackc.low %vm270_vm7, %vm268_vm1  ;;  %vm273_vm1 = vcmp.eq.s32.totalorder %v232_v30, %v1361_v18  ;;  %vm463_vm9 = vcmp.eq.s32.totalorder %v231_v29, %v1367_v24 }
  0x71   : > { %892 = vmatprep.subr.msk.bf16.mxu0 %vm891_vm6, %v1165_v26  ;;  %vm893_vm12 = vmpackc.low %vm269_vm8, %vm267_vm4  ;;  %vm466_vm4 = vcmp.eq.s32.totalorder %v232_v30, %v1369_v25  ;;  %vm465_vm6 = vcmp.eq.s32.totalorder %v232_v30, %v1367_v24 }
  0x72   : > { %894 = vmatpush1.bf16.msk.msra.mxu0 %vm893_vm12, %v1165_v26  ;;  %vm923_vm15 = vmpackc.low %vm462_vm5, %vm460_vm10  ;;  %vm276_vm5 = vcmp.eq.s32.totalorder %v233_v31, %v1363_v19  ;;  %vm278_vm12 = vcmp.eq.s32.totalorder %v234_v32, %v1363_v19 }
  0x73   : > { %924 = vmatprep.subr.msk.bf16.mxu1 %vm923_vm15, %v1165_v26  ;;  %vm925_vm7 = vmpackc.low %vm461_vm14, %vm459_vm11  ;;  %vm275_vm14 = vcmp.eq.s32.totalorder %v233_v31, %v1361_v18  ;;  %vm468_vm15 = vcmp.eq.s32.totalorder %v233_v31, %v1369_v25 }
  0x74   : > { %926 = vmatpush1.bf16.msk.msra.mxu1 %vm925_vm7, %v1165_v26  ;;  %vm895_vm8 = vmpackc.low %vm274_vm0, %vm272_vm13  ;;  %vm277_vm13 = vcmp.eq.s32.totalorder %v234_v32, %v1361_v18  ;;  %vm467_vm7 = vcmp.eq.s32.totalorder %v233_v31, %v1367_v24 }
  0x75   : > { %896 = vmatprep.subr.msk.bf16.mxu0 %vm895_vm8, %v1165_v26  ;;  %vm897_vm10 = vmpackc.low %vm273_vm1, %vm271_vm2  ;;  %vm470_vm2 = vcmp.eq.s32.totalorder %v234_v32, %v1369_v25  ;;  %vm469_vm8 = vcmp.eq.s32.totalorder %v234_v32, %v1367_v24 }
  0x76   : > { %898 = vmatpush1.bf16.msk.msra.mxu0 %vm897_vm10, %v1165_v26  ;;  %vm927_vm11 = vmpackc.low %vm466_vm4, %vm464_vm3  ;;  %vm280_vm4 = vcmp.eq.s32.totalorder %v235_v33, %v1363_v19  ;;  %vm282_vm10 = vcmp.eq.s32.totalorder %v236_v34, %v1363_v19 }
  0x77   : > { %928 = vmatprep.subr.msk.bf16.mxu1 %vm927_vm11, %v1165_v26  ;;  %vm929_vm0 = vmpackc.low %vm465_vm6, %vm463_vm9  ;;  %vm279_vm6 = vcmp.eq.s32.totalorder %v235_v33, %v1361_v18  ;;  %vm472_vm11 = vcmp.eq.s32.totalorder %v235_v33, %v1369_v25 }
  0x78   : > { %930 = vmatpush1.bf16.msk.msra.mxu1 %vm929_vm0, %v1165_v26  ;;  %vm899_vm1 = vmpackc.low %vm278_vm12, %vm276_vm5  ;;  %vm281_vm5 = vcmp.eq.s32.totalorder %v236_v34, %v1361_v18  ;;  %vm471_vm0 = vcmp.eq.s32.totalorder %v235_v33, %v1367_v24 }
  0x79   : > { %900 = vmatprep.subr.msk.bf16.mxu0 %vm899_vm1, %v1165_v26  ;;  %vm901_vm3 = vmpackc.low %vm277_vm13, %vm275_vm14  ;;  %vm474_vm14 = vcmp.eq.s32.totalorder %v236_v34, %v1369_v25  ;;  %vm473_vm1 = vcmp.eq.s32.totalorder %v236_v34, %v1367_v24 }
  0x7a   : > { %902 = vmatpush1.bf16.msk.msra.mxu0 %vm901_vm3, %v1165_v26  ;;  %vm931_vm9 = vmpackc.low %vm470_vm2, %vm468_vm15  ;;  %vm284_vm2 = vcmp.eq.s32.totalorder %v237_v35, %v1363_v19  ;;  %vm286_vm3 = vcmp.eq.s32.totalorder %v238_v36, %v1363_v19 }
  0x7b   : > { %932 = vmatprep.subr.msk.bf16.mxu1 %vm931_vm9, %v1165_v26  ;;  %vm933_vm12 = vmpackc.low %vm469_vm8, %vm467_vm7  ;;  %vm283_vm8 = vcmp.eq.s32.totalorder %v237_v35, %v1361_v18  ;;  %vm285_vm9 = vcmp.eq.s32.totalorder %v238_v36, %v1361_v18 }
  0x7c   : > { %934 = vmatpush1.bf16.msk.msra.mxu1 %vm933_vm12, %v1165_v26  ;;  %vm903_vm13 = vmpackc.low %vm282_vm10, %vm280_vm4  ;;  %vm476_vm10 = vcmp.eq.s32.totalorder %v237_v35, %v1369_v25  ;;  %vm478_vm12 = vcmp.eq.s32.totalorder %v238_v36, %v1369_v25 }
  0x7d   : > { %904 = vmatprep.subr.msk.bf16.mxu0 %vm903_vm13, %v1165_v26  ;;  %vm905_vm15 = vmpackc.low %vm281_vm5, %vm279_vm6  ;;  %vm475_vm5 = vcmp.eq.s32.totalorder %v237_v35, %v1367_v24  ;;  %vm477_vm13 = vcmp.eq.s32.totalorder %v238_v36, %v1367_v24 }
  0x7e   : > { %906 = vmatpush1.bf16.msk.msra.mxu0 %vm905_vm15, %v1165_v26  ;;  %vm935_vm7 = vmpackc.low %vm474_vm14, %vm472_vm11 }
  0x7f   : > { %936 = vmatprep.subr.msk.bf16.mxu1 %vm935_vm7, %v1165_v26  ;;  %vm937_vm4 = vmpackc.low %vm473_vm1, %vm471_vm0 }
  0x80   : > { %938 = vmatpush1.bf16.msk.msra.mxu1 %vm937_vm4, %v1165_v26  ;;  %vm907_vm6 = vmpackc.low %vm286_vm3, %vm284_vm2 }
  0x81   : > { %908 = vmatprep.subr.msk.bf16.mxu0 %vm907_vm6, %v1165_v26  ;;  %vm909_vm11 = vmpackc.low %vm285_vm9, %vm283_vm8 }
  0x82   : > { %910 = vmatpush1.bf16.msk.msra.mxu0 %vm909_vm11, %v1165_v26  ;;  %vm939_vm14 = vmpackc.low %vm478_vm12, %vm476_vm10 }
  0x83   : > { %940 = vmatprep.subr.msk.bf16.mxu1 %vm939_vm14, %v1165_v26  ;;  %vm941_vm0 = vmpackc.low %vm477_vm13, %vm475_vm5 }
  0x84   : > { %942 = vmatpush1.bf16.msk.msra.mxu1 %vm941_vm0, %v1165_v26 }
  0x85   : > { %416 = vmatmul.mubr.f32.vlgmr.msra.gmra.mrb[0].mxu0 %v213_v37 }
  0x87   : > { %608 = vmatmul.mubr.f32.vlgmr.msra.gmra.mrb[0].mxu1 %v213_v37 }
 0x158   : > { %v417_v38 = vpop.f32.mrb[0].mxu0 }
 0x159   : > { %v419_v39 = vpop.f32.mrb[1].mxu0 }
 0x15a   : > { %v422_v40 = vmax.f32 %v417_v38, %v419_v39  ;;  %v609_v41 = vpop.f32.mrb[0].mxu1 }
 0x15b   : > { %v611_v42 = vpop.f32.mrb[1].mxu1 }
 0x15c   : > { %v614_v43 = vmax.f32 %v422_v40, %v609_v41 }
 0x15e   : > { %v615_v44 = vmax.f32 %v614_v43, %v611_v42 }
 0x160   : > { %616 = vst [vmem:[%s212_s16] sm:$0xf] %v615_v44 }
 0x161   : > { %1086 = shalt.err (!%p1083_p2)
}
 0x162   : > { %s1087_s3 = scalar_lea.hbm %s1492_s27, 64  ;;  %s1091_s18 = scalar_lea.hbm %s1543_s2, 128 }
 0x163   : > { %p1088_p9 = scmp.ne.s32.totalorder %s1492_s27, %s1087_s3  ;;  %p1092_p6 = scmp.lt.u32.totalorder %s1492_s27, %s1543_s2 }
 0x164   : > { %p1093_p13 = scmp.lt.u32.totalorder %s1091_s18, %s1087_s3  ;;  %p1095_p0 = scmp.lt.u32.totalorder %s1087_s3, %s1492_s27 }
 0x165   : > { %p1089_p11 = pnand %p1088_p9, %p1556_p5 }
 0x166   : > { %p1094_p8 = por %p1093_p13, %p1092_p6 }
 0x167   : > { %p1090_p3 = pneg %p1089_p11 }
 0x168   : > { %p1096_p7 = por %p1095_p0, %p1094_p8 }
 0x16a   : > { %p1097_p4 = pnand %p1096_p7, %p1090_p3 }
 0x16c   : > { %1100 = shalt.err (!%p1097_p4)
}
 0x16d   : > { %947 = dma.vmem_to_hbm [thread:$0]  (%p1556_p5), %s1494_s19, 64, %s1492_s27, %s618_s28  }
 0x16e PF: > { %s644_s5 = sand.u32 1, %s1139_s9   ;;  %p1557_p10 = scmp.ne.s32.totalorder %s1549_s24, 0 }
 0x16f   : > { %p1558_p12 = scmp.ge.s32.totalorder %s1159_s14, 2  ;;  %s645_s7 = scalar_lea.sflag [#allocation4], %s644_s5 }
 0x171   : > { %p957_p1 = pnand %p1558_p12, %p1557_p10 }
 0x173   : > { %1134 = dma.done.wait (!%p957_p1), %s645_s7, 64  }
 0x174   : > { %1136 = vsyncadd (!%p957_p1), %s645_s7, 4294967232  ;;  %s21_s14 = sadd.s32 1, %s1159_s14   ;;  %s1559_s9 = smov %s1143_s10 }
 0x175   : > { %p18_p2 = scmp.ge.s32.totalorder %s21_s14, 4   ;;  %s1560_s10 = smov %s1147_s11 }
 0x176   : > { %s1561_s11 = smov %s1238_s23  ;;  %s1562_s12 = smov %s1155_s13 }
 0x177   : > { %s1563_s13 = smov %s1565_s17  ;;  %20 = sbr.rel (!%p18_p2) target bundleno = 8 (0x8), region = 86 }
 0x17e   :  { %650 = vsyncpa [#allocation3], 1 }
 0x17f   :  { %652 = vsyncpa [#allocation3 + $0x1], 1 }
 0x180   :  { %653 = vsyncpa [#allocation6], 1 }
 0x181   :  { %655 = vsyncpa [#allocation6 + $0x1], 1 }
 0x182   :  { %656 = vsyncpa [#allocation4], 1 }
 0x183   :  { %658 = vsyncpa [#allocation4 + $0x1], 1 }

</bundles_post_ra>
